<compile_context>
chip_gen: v5e
topology: v5e:2x2
jax: 0.10.0
libtpu: 0.0.40
codegen_flags: <defaults>
</compile_context>

<pallas_src>
import jax
import jax.numpy as jnp
from jax.experimental import pallas as pl
from jax.experimental.pallas import tpu as pltpu


# ----------------------------------------------------------------------------
# Fused decoder kernel: one batch image per grid step, two matmuls, all VMEM.
# ----------------------------------------------------------------------------
def _decoder_fused_kernel(x_ref, w1_ref, b1_ref, w2_ref, b2_ref, o_ref,
                          rc1_ref, rc2_ref):
    # x_ref : (1, H, W*Cin)                  lane-dense input rows (mxu dtype)
    # w1_ref: (3*W*Cin, W*Cmid)              width-banded conv1 weights
    # b1_ref: (1, W*Cmid)                    conv1 bias tiled over W (f32)
    # w2_ref: (2*W*Cmid, W*4*Cout)           width-banded phase-combined deconv
    # b2_ref: (1, W*4*Cout)                  deconv bias tiled over W,phases (f32)
    # o_ref : (1, H, W*4*Cout)               phase-packed lane-dense output (f32)
    # rc1_ref: VMEM (H, 3*W*Cin)             stage-1 row-im2col scratch
    # rc2_ref: VMEM (H, 2*W*Cmid)            stage-2 row-im2col scratch
    _, h, wcin = x_ref.shape
    wcmid = b1_ref.shape[-1]
    dt = rc1_ref.dtype

    x = x_ref[0]                                       # (H, W*Cin)

    # Row-shifted copies of the input: the ONLY zeros written are the two halo
    # rows (top / bottom padded rows).  Left/right pad taps are folded into the
    # banded weights, so no scratch zero-fill is needed at all.
    zrow_in = jnp.zeros((1, wcin), dt)
    x_dn = jnp.concatenate([zrow_in, x[:h - 1]], axis=0)   # padded row y+0
    x_up = jnp.concatenate([x[1:], zrow_in], axis=0)       # padded row y+2

    # Stage-1 row im2col: section ky holds padded image row (y + ky).
    rc1_ref[:, 0 * wcin:1 * wcin] = x_dn
    rc1_ref[:, 1 * wcin:2 * wcin] = x
    rc1_ref[:, 2 * wcin:3 * wcin] = x_up

    # Stage 1: 3x3 conv + bias + ReLU as ONE matmul (K = 3*W*Cin), f32 epilogue.
    y1 = jnp.dot(rc1_ref[...], w1_ref[...],
                 preferred_element_type=jnp.float32)       # (H, W*Cmid)
    y1 = jnp.maximum(y1 + b1_ref[...], 0.0)
    y1c = y1.astype(dt)

    # Stage-2 row im2col: section a holds stage-1 row (q + a); row h is halo.
    zrow_mid = jnp.zeros((1, wcmid), dt)
    y1_up = jnp.concatenate([y1c[1:], zrow_mid], axis=0)
    rc2_ref[:, 0 * wcmid:1 * wcmid] = y1c
    rc2_ref[:, 1 * wcmid:2 * wcmid] = y1_up

    # Stage 2: stride-2 ConvTranspose2d + bias + ReLU as ONE matmul
    # (K = 2*W*Cmid).  Output columns are packed (R, py, px, Cout) so the store
    # is a dense, lane-aligned write of the full (1, H, W*4*Cout) block.
    y2 = jnp.dot(rc2_ref[...], w2_ref[...],
                 preferred_element_type=jnp.float32)       # (H, W*4*Cout)
    o_ref[0] = jnp.maximum(y2 + b2_ref[...], 0.0).astype(o_ref.dtype)


# ----------------------------------------------------------------------------
# Wrapper-side construction of the width-banded weight matrices.
# ----------------------------------------------------------------------------
def _build_stage1_weights(w1, b1, w_img, dtype):
    # w1: torch Conv2d OIHW (Cmid, Cin, 3, 3);  out columns pack (xo, m).
    cmid, cin = w1.shape[0], w1.shape[1]
    w1_hwio = jnp.transpose(w1, (2, 3, 1, 0))              # (ky, kx, ci, m)
    xi = jnp.arange(w_img)[:, None]                        # input column
    xo = jnp.arange(w_img)[None, :]                        # output column
    kx = xi - xo + 1                                       # tap index (pad=1)
    valid = (kx >= 0) & (kx <= 2)
    big = w1_hwio[:, jnp.clip(kx, 0, 2), :, :]             # (3, w, w, ci, m)
    big = jnp.where(valid[None, :, :, None, None], big, 0.0)
    big = jnp.transpose(big, (0, 1, 3, 2, 4))              # (ky, xi, ci, xo, m)
    W1 = big.reshape(3 * w_img * cin, w_img * cmid).astype(dtype)
    b1_row = jnp.tile(b1, w_img).reshape(1, w_img * cmid).astype(jnp.float32)
    return W1, b1_row


def _build_stage2_weights(w2, b2, w_img, dtype):
    # w2: torch ConvTranspose2d (Cmid, Cout, 3, 3), stride=2, pad=1, out_pad=1.
    # 4-phase decomposition: out[2Q+py, 2R+px] = sum_{a,b} y[Q+a, R+b] @ Wph[a,b,py,px]
    # with tap (ky, kx) = (py+1-2a, px+1-2b) (zero block if out of range).
    cmid, cout = w2.shape[0], w2.shape[1]
    w2_hw = jnp.transpose(w2, (2, 3, 0, 1))                # (ky, kx, ci, co)
    zero_blk = jnp.zeros((cmid, cout), w2.dtype)
    blocks = []
    for a in range(2):
        for b in range(2):
            for py in range(2):
                for px in range(2):
                    ky, kx = py + 1 - 2 * a, px + 1 - 2 * b
                    ok = (0 <= ky < 3) and (0 <= kx < 3)
                    blocks.append(w2_hw[ky, kx] if ok else zero_blk)
    wph = jnp.stack(blocks).reshape(2, 2, 2, 2, cmid, cout)  # (a, b, py, px, ci, co)

    ri = jnp.arange(w_img)[:, None]                        # stage-1 column read
    ro = jnp.arange(w_img)[None, :]                        # coarse output column
    b_idx = ri - ro
    valid = (b_idx >= 0) & (b_idx <= 1)
    big = wph[:, jnp.clip(b_idx, 0, 1)]                    # (2, w, w, 2, 2, ci, co)
    big = jnp.where(valid[None, :, :, None, None, None, None], big, 0.0)
    big = jnp.transpose(big, (0, 1, 5, 2, 3, 4, 6))        # (a, ri, ci, ro, py, px, co)
    W2 = big.reshape(2 * w_img * cmid, w_img * 4 * cout).astype(dtype)
    b2_row = jnp.tile(b2, w_img * 4).reshape(1, w_img * 4 * cout).astype(jnp.float32)
    return W2, b2_row


# ----------------------------------------------------------------------------
# Decoder forward (PyTorch-equivalent), NCHW in / NCHW out.
# ----------------------------------------------------------------------------
def decoder_forward(x_nchw, params, *, mxu_dtype=jnp.float32):
    n, cin, h, w = x_nchw.shape
    w1, b1 = params["w1"], params["b1"]      # Conv2d:          (Cmid,Cin,3,3), (Cmid,)
    w2, b2 = params["w2"], params["b2"]      # ConvTranspose2d: (Cmid,Cout,3,3), (Cout,)
    cmid = w1.shape[0]
    cout = w2.shape[1]

    # NCHW -> lane-dense (N, H, W*Cin): one wide contiguous DMA row per image
    # row instead of 16-byte channel stripes.
    x = jnp.transpose(x_nchw, (0, 2, 3, 1)).reshape(n, h, w * cin).astype(mxu_dtype)

    W1, b1_row = _build_stage1_weights(w1, b1, w, mxu_dtype)
    W2, b2_row = _build_stage2_weights(w2, b2, w, mxu_dtype)

    out_packed = pl.pallas_call(
        _decoder_fused_kernel,
        out_shape=jax.ShapeDtypeStruct((n, h, w * 4 * cout), jnp.float32),
        grid=(n,),
        in_specs=[
            pl.BlockSpec((1, h, w * cin), lambda i: (i, 0, 0)),
            pl.BlockSpec((3 * w * cin, w * cmid), lambda i: (0, 0)),
            pl.BlockSpec((1, w * cmid), lambda i: (0, 0)),
            pl.BlockSpec((2 * w * cmid, w * 4 * cout), lambda i: (0, 0)),
            pl.BlockSpec((1, w * 4 * cout), lambda i: (0, 0)),
        ],
        out_specs=pl.BlockSpec((1, h, w * 4 * cout), lambda i: (i, 0, 0)),
        scratch_shapes=[
            pltpu.VMEM((h, 3 * w * cin), mxu_dtype),    # stage-1 row im2col
            pltpu.VMEM((h, 2 * w * cmid), mxu_dtype),   # stage-2 row im2col
        ],
        compiler_params=pltpu.CompilerParams(
            dimension_semantics=("parallel",)),
    )(x, W1, b1_row, W2, b2_row)

    # Un-pack phases (R, py, px, co) and convert to NCHW with ONE transpose.
    # TODO(synk): drop this if the consumer accepts NHWC / phase-packed output.
    o6 = out_packed.reshape(n, h, w, 2, 2, cout)
    return jnp.transpose(o6, (0, 5, 1, 3, 2, 4)).reshape(n, cout, 2 * h, 2 * w)


# ----------------------------------------------------------------------------
# Pure-JAX reference (lax convs) for the correctness check.
# ----------------------------------------------------------------------------
def decoder_reference(x, params):
    y = jax.lax.conv_general_dilated(
        x, params["w1"], window_strides=(1, 1), padding=((1, 1), (1, 1)),
        dimension_numbers=("NCHW", "OIHW", "NCHW"))
    y = jax.nn.relu(y + params["b1"][None, :, None, None])
    w2 = jnp.flip(jnp.transpose(params["w2"], (1, 0, 2, 3)), axis=(2, 3))
    z = jax.lax.conv_general_dilated(
        y, w2, window_strides=(1, 1), padding=((1, 2), (1, 2)),
        lhs_dilation=(2, 2), dimension_numbers=("NCHW", "OIHW", "NCHW"))
    return jax.nn.relu(z + params["b2"][None, :, None, None])


if __name__ == "__main__":
    # Small shapes consistent with the module: Decoder(in=4, mid=8, out=4)
    N, C_in, C_mid, C_out, H, W = 2, 4, 8, 4, 16, 16

    key = jax.random.PRNGKey(0)
    k1, k2, k3, k4, kx = jax.random.split(key, 5)
    params = {
        # Conv2d(in, mid, 3, padding=1): weight OIHW (mid, in, 3, 3), bias (mid,)
        "w1": 0.1 * jax.random.normal(k1, (C_mid, C_in, 3, 3), jnp.float32),
        "b1": 0.1 * jax.random.normal(k2, (C_mid,), jnp.float32),
        # ConvTranspose2d(mid, out, 3, stride=2, pad=1, out_pad=1):
        # weight (in=mid, out, 3, 3), bias (out,)
        "w2": 0.1 * jax.random.normal(k3, (C_mid, C_out, 3, 3), jnp.float32),
        "b2": 0.1 * jax.random.normal(k4, (C_out,), jnp.float32),
    }

    x = jax.random.normal(kx, (N, C_in, H, W), jnp.float32)  # NCHW like PyTorch

    ref = jax.block_until_ready(decoder_reference(x, params))
    fwd = jax.jit(decoder_forward, static_argnames=("mxu_dtype",))

    # f32 operands: exact semantics check.
    out = jax.block_until_ready(fwd(x, params, mxu_dtype=jnp.float32))
    assert out.shape == (N, C_out, 2 * H, 2 * W), out.shape
    assert jnp.allclose(out, ref, atol=1e-4, rtol=1e-4), (
        float(jnp.max(jnp.abs(out - ref))))

    # bf16 operands (recommended for v6e/v7x): f32 accumulation + f32 epilogue,
    # checked at a bf16-appropriate tolerance.
    out_bf = jax.block_until_ready(fwd(x, params, mxu_dtype=jnp.bfloat16))
    assert jnp.allclose(out_bf, ref, atol=5e-2, rtol=5e-2), (
        float(jnp.max(jnp.abs(out_bf - ref))))

    print("KERNEL_OK")
</pallas_src>

<mosaic_0001>
module attributes {stable_mosaic.version = 11 : i64} {
  func.func @_decoder_fused_kernel(%arg0: i32, %arg1: memref<1x16x64xf32, #tpu.memory_space<vmem>>, %arg2: memref<192x128xf32, #tpu.memory_space<vmem>>, %arg3: memref<1x128xf32, #tpu.memory_space<vmem>>, %arg4: memref<256x256xf32, #tpu.memory_space<vmem>>, %arg5: memref<1x256xf32, #tpu.memory_space<vmem>>, %arg6: memref<1x16x256xf32, #tpu.memory_space<vmem>>, %arg7: memref<16x192xf32, #tpu.memory_space<vmem>>, %arg8: memref<16x256xf32, #tpu.memory_space<vmem>>) attributes {dimension_semantics = [#tpu.dimension_semantics<parallel>], iteration_bounds = array<i64: 2>, scalar_prefetch = 0 : i64, scratch_operands = 2 : i64, tpu.core_type = #tpu.core_type<tc>, window_params = [{transform_indices = @transform_0, window_bounds = array<i64: 1, 16, 64>}, {pipeline_mode = #tpu.pipeline_mode<synchronous>, transform_indices = @transform_1, window_bounds = array<i64: 192, 128>}, {pipeline_mode = #tpu.pipeline_mode<synchronous>, transform_indices = @transform_2, window_bounds = array<i64: 1, 128>}, {pipeline_mode = #tpu.pipeline_mode<synchronous>, transform_indices = @transform_3, window_bounds = array<i64: 256, 256>}, {pipeline_mode = #tpu.pipeline_mode<synchronous>, transform_indices = @transform_4, window_bounds = array<i64: 1, 256>}, {transform_indices = @transform_5, window_bounds = array<i64: 1, 16, 256>}]} {
    %c0 = arith.constant 0 : index
    %c0_0 = arith.constant 0 : index
    %c0_1 = arith.constant 0 : index
    %0 = vector.load %arg1[%c0, %c0_0, %c0_1] : memref<1x16x64xf32, #tpu.memory_space<vmem>>, vector<1x16x64xf32>
    %1 = vector.shape_cast %0 : vector<1x16x64xf32> to vector<16x64xf32>
    %cst = arith.constant 0.000000e+00 : f32
    %2 = vector.broadcast %cst : f32 to vector<1x64xf32>
    %3 = vector.extract_strided_slice %1 {offsets = [0, 0], sizes = [15, 64], strides = [1, 1]} : vector<16x64xf32> to vector<15x64xf32>
    %4 = tpu.concatenate %2, %3 in 0 : vector<1x64xf32>, vector<15x64xf32> -> vector<16x64xf32>
    %5 = vector.extract_strided_slice %1 {offsets = [1, 0], sizes = [15, 64], strides = [1, 1]} : vector<16x64xf32> to vector<15x64xf32>
    %6 = tpu.concatenate %5, %2 in 0 : vector<15x64xf32>, vector<1x64xf32> -> vector<16x64xf32>
    %c0_2 = arith.constant 0 : index
    %c0_3 = arith.constant 0 : index
    %7 = vector.load %arg7[%c0_2, %c0_3] : memref<16x192xf32, #tpu.memory_space<vmem>>, vector<16x64xf32>
    tpu.vector_store %arg7[%c0_2, %c0_3], %4 {strides = array<i32>} : memref<16x192xf32, #tpu.memory_space<vmem>>, vector<16x64xf32>,
    %c0_4 = arith.constant 0 : index
    %c64 = arith.constant 64 : index
    %8 = vector.load %arg7[%c0_4, %c64] : memref<16x192xf32, #tpu.memory_space<vmem>>, vector<16x64xf32>
    tpu.vector_store %arg7[%c0_4, %c64], %1 {strides = array<i32>} : memref<16x192xf32, #tpu.memory_space<vmem>>, vector<16x64xf32>,
    %c0_5 = arith.constant 0 : index
    %c128 = arith.constant 128 : index
    %9 = vector.load %arg7[%c0_5, %c128] : memref<16x192xf32, #tpu.memory_space<vmem>>, vector<16x64xf32>
    tpu.vector_store %arg7[%c0_5, %c128], %6 {strides = array<i32>} : memref<16x192xf32, #tpu.memory_space<vmem>>, vector<16x64xf32>,
    %c0_6 = arith.constant 0 : index
    %c0_7 = arith.constant 0 : index
    %10 = vector.load %arg7[%c0_6, %c0_7] : memref<16x192xf32, #tpu.memory_space<vmem>>, vector<16x192xf32>
    %c0_8 = arith.constant 0 : index
    %c0_9 = arith.constant 0 : index
    %11 = vector.load %arg2[%c0_8, %c0_9] : memref<192x128xf32, #tpu.memory_space<vmem>>, vector<192x128xf32>
    %cst_10 = arith.constant dense<0.000000e+00> : vector<16x128xf32>
    %12 = tpu.matmul %10, %11, %cst_10 {dimension_numbers = #tpu.dot_dimension_numbers<[1], [0], [0], [1], [0, 0, 1, 1], [], []>} : vector<16x192xf32>, vector<192x128xf32>, vector<16x128xf32> -> vector<16x128xf32>
    %c0_11 = arith.constant 0 : index
    %c0_12 = arith.constant 0 : index
    %13 = vector.load %arg3[%c0_11, %c0_12] : memref<1x128xf32, #tpu.memory_space<vmem>>, vector<1x128xf32>
    %14 = vector.broadcast %13 : vector<1x128xf32> to vector<16x128xf32>
    %15 = arith.addf %12, %14 : vector<16x128xf32>
    %cst_13 = arith.constant 0.000000e+00 : f32
    %16 = vector.broadcast %cst_13 : f32 to vector<16x128xf32>
    %17 = arith.maximumf %15, %16 : vector<16x128xf32>
    %cst_14 = arith.constant 0.000000e+00 : f32
    %18 = vector.broadcast %cst_14 : f32 to vector<1x128xf32>
    %19 = vector.extract_strided_slice %17 {offsets = [1, 0], sizes = [15, 128], strides = [1, 1]} : vector<16x128xf32> to vector<15x128xf32>
    %20 = tpu.concatenate %19, %18 in 0 : vector<15x128xf32>, vector<1x128xf32> -> vector<16x128xf32>
    %c0_15 = arith.constant 0 : index
    %c0_16 = arith.constant 0 : index
    %21 = vector.load %arg8[%c0_15, %c0_16] : memref<16x256xf32, #tpu.memory_space<vmem>>, vector<16x128xf32>
    tpu.vector_store %arg8[%c0_15, %c0_16], %17 {strides = array<i32>} : memref<16x256xf32, #tpu.memory_space<vmem>>, vector<16x128xf32>,
    %c0_17 = arith.constant 0 : index
    %c128_18 = arith.constant 128 : index
    %22 = vector.load %arg8[%c0_17, %c128_18] : memref<16x256xf32, #tpu.memory_space<vmem>>, vector<16x128xf32>
    tpu.vector_store %arg8[%c0_17, %c128_18], %20 {strides = array<i32>} : memref<16x256xf32, #tpu.memory_space<vmem>>, vector<16x128xf32>,
    %c0_19 = arith.constant 0 : index
    %c0_20 = arith.constant 0 : index
    %23 = vector.load %arg8[%c0_19, %c0_20] : memref<16x256xf32, #tpu.memory_space<vmem>>, vector<16x256xf32>
    %c0_21 = arith.constant 0 : index
    %c0_22 = arith.constant 0 : index
    %24 = vector.load %arg4[%c0_21, %c0_22] : memref<256x256xf32, #tpu.memory_space<vmem>>, vector<256x256xf32>
    %cst_23 = arith.constant dense<0.000000e+00> : vector<16x256xf32>
    %25 = tpu.matmul %23, %24, %cst_23 {dimension_numbers = #tpu.dot_dimension_numbers<[1], [0], [0], [1], [0, 0, 1, 1], [], []>} : vector<16x256xf32>, vector<256x256xf32>, vector<16x256xf32> -> vector<16x256xf32>
    %c0_24 = arith.constant 0 : index
    %c0_25 = arith.constant 0 : index
    %26 = vector.load %arg5[%c0_24, %c0_25] : memref<1x256xf32, #tpu.memory_space<vmem>>, vector<1x256xf32>
    %27 = vector.broadcast %26 : vector<1x256xf32> to vector<16x256xf32>
    %28 = arith.addf %25, %27 : vector<16x256xf32>
    %cst_26 = arith.constant 0.000000e+00 : f32
    %29 = vector.broadcast %cst_26 : f32 to vector<16x256xf32>
    %30 = arith.maximumf %28, %29 : vector<16x256xf32>
    %c0_27 = arith.constant 0 : index
    %c0_28 = arith.constant 0 : index
    %c0_29 = arith.constant 0 : index
    %31 = vector.load %arg6[%c0_27, %c0_28, %c0_29] : memref<1x16x256xf32, #tpu.memory_space<vmem>>, vector<1x16x256xf32>
    %32 = vector.shape_cast %31 : vector<1x16x256xf32> to vector<16x256xf32>
    %33 = vector.shape_cast %30 : vector<16x256xf32> to vector<1x16x256xf32>
    tpu.vector_store %arg6[%c0_27, %c0_28, %c0_29], %33 {strides = array<i32>} : memref<1x16x256xf32, #tpu.memory_space<vmem>>, vector<1x16x256xf32>,
    return
  }
  func.func @transform_0(%arg0: i32) -> (i32, i32, i32) {
    %c0_i32 = arith.constant 0 : i32
    %c0_i32_0 = arith.constant 0 : i32
    %c0_i32_1 = arith.constant 0 : i32
    return %arg0, %c0_i32, %c0_i32_0 : i32, i32, i32
  }
  func.func @transform_1(%arg0: i32) -> (i32, i32) {
    %c0_i32 = arith.constant 0 : i32
    %c0_i32_0 = arith.constant 0 : i32
    %c0_i32_1 = arith.constant 0 : i32
    return %c0_i32, %c0_i32_0 : i32, i32
  }
  func.func @transform_2(%arg0: i32) -> (i32, i32) {
    %c0_i32 = arith.constant 0 : i32
    %c0_i32_0 = arith.constant 0 : i32
    %c0_i32_1 = arith.constant 0 : i32
    return %c0_i32, %c0_i32_0 : i32, i32
  }
  func.func @transform_3(%arg0: i32) -> (i32, i32) {
    %c0_i32 = arith.constant 0 : i32
    %c0_i32_0 = arith.constant 0 : i32
    %c0_i32_1 = arith.constant 0 : i32
    return %c0_i32, %c0_i32_0 : i32, i32
  }
  func.func @transform_4(%arg0: i32) -> (i32, i32) {
    %c0_i32 = arith.constant 0 : i32
    %c0_i32_0 = arith.constant 0 : i32
    %c0_i32_1 = arith.constant 0 : i32
    return %c0_i32, %c0_i32_0 : i32, i32
  }
  func.func @transform_5(%arg0: i32) -> (i32, i32, i32) {
    %c0_i32 = arith.constant 0 : i32
    %c0_i32_0 = arith.constant 0 : i32
    %c0_i32_1 = arith.constant 0 : i32
    return %arg0, %c0_i32, %c0_i32_0 : i32, i32, i32
  }
}

</mosaic_0001>

<bundles_post_ra>
// kernel: tile.18
= control target key start
LH: loop header
LB: loop body
LE: loop exit
PB: predicated region body
PF: predicated region fallthrough
CT: control target
= control target key end

     0   :  { %s64_s0 = inlined_call_operand.vmem [shape: f32[4], index: 0, kind: input, shape index: {}]   ;;  %s65_s1 = inlined_call_operand.vmem [shape: f32[64,4], index: 1, kind: output, shape index: {}]  }
   0x1   :  { %v4_v0 = vld [vmem:[%s64_s0] ss:$0 sm:$0xff] }
   0x2   :  { %5 = vst [vmem:[%s65_s1] sm:$0xff] %v4_v0 }
   0x3   :  { %20 = vst [vmem:[%s65_s1 + $0x8] sm:$0xff] %v4_v0 }
   0x4   :  { %21 = vst [vmem:[%s65_s1 + $0x10] sm:$0xff] %v4_v0 }
   0x5   :  { %22 = vst [vmem:[%s65_s1 + $0x18] sm:$0xff] %v4_v0 }
   0x6   :  { %23 = vst [vmem:[%s65_s1 + $0x20] sm:$0xff] %v4_v0 }
   0x7   :  { %24 = vst [vmem:[%s65_s1 + $0x28] sm:$0xff] %v4_v0 }
   0x8   :  { %25 = vst [vmem:[%s65_s1 + $0x30] sm:$0xff] %v4_v0 }
   0x9   :  { %26 = vst [vmem:[%s65_s1 + $0x38] sm:$0xff] %v4_v0 }

// kernel: tile.19
= control target key start
LH: loop header
LB: loop body
LE: loop exit
PB: predicated region body
PF: predicated region fallthrough
CT: control target
= control target key end

     0   :  { %vm5_vm0 = vcmask 1041409   ;;  %s426_s14 = smov 124   ;;  %s427_s15 = smov 116   ;;  %vm7_vm1 = vcmask 31744   ;;  %vm17_vm2 = vcmask 1048544   ;;  %vm27_vm3 = vcmask 1015744   ;;  %s697_s0 = inlined_call_operand.vmem [shape: f32[64,4], index: 0, kind: input, shape index: {}]   ;;  %s698_s1 = inlined_call_operand.vmem [shape: f32[1,256], index: 1, kind: output, shape index: {}]  }
   0x1   :  { %v332_v0 = vld [vmem:[%s697_s0 + $0x1f] sm:$0x1]   ;;  %v336_v3 = vld [vmem:[%s697_s0 + $0x1d] sm:$0x1]   ;;  %v334_v6 = vld [vmem:[%s697_s0 + $0x1e] sm:$0x1]  }
   0x2   :  { %v333_v1 = vld [vmem:[%s697_s0 + $0x3e] sm:$0x2]   ;;  %v337_v4 = vld [vmem:[%s697_s0 + $0x3c] sm:$0x2]   ;;  %v335_v7 = vld [vmem:[%s697_s0 + $0x3d] sm:$0x2]  }
   0x3   :  { %v14_v2 = vsel %vm5_vm0, %v333_v1, %v332_v0  ;;  %v34_v5 = vsel %vm5_vm0, %v337_v4, %v336_v3  ;;  %v338_v8 = vld [vmem:[%s697_s0 + $0x1c] sm:$0x1]   ;;  %v24_v10 = vsel %vm5_vm0, %v335_v7, %v334_v6  ;;  %v340_v11 = vld [vmem:[%s697_s0 + $0x1b] sm:$0x1]   ;;  %s428_s28 = smov 108   ;;  %s429_s29 = smov 120  }
   0x4   :  { %15 = vrot.lane.b32.xlu0 %v14_v2, %s426_s14  ;;  %35 = vrot.lane.b32.xlu1 %v34_v5, %s427_s15  ;;  %v339_v9 = vld [vmem:[%s697_s0 + $0x3b] sm:$0x2]   ;;  %v341_v12 = vld [vmem:[%s697_s0 + $0x3a] sm:$0x2]   ;;  %s430_s30 = smov 112   ;;  %s431_s14 = smov 104  }
   0x5   :  { %v44_v13 = vsel %vm5_vm0, %v339_v9, %v338_v8  ;;  %v54_v14 = vsel %vm5_vm0, %v341_v12, %v340_v11  ;;  %v342_v15 = vld [vmem:[%s697_s0 + $0x1a] sm:$0x1]   ;;  %v344_v17 = vld [vmem:[%s697_s0 + $0x19] sm:$0x1]   ;;  %v346_v19 = vld [vmem:[%s697_s0 + $0x18] sm:$0x1]  }
   0x6   :  { %55 = vrot.lane.b32.xlu2 %v54_v14, %s428_s28  ;;  %v343_v16 = vld [vmem:[%s697_s0 + $0x39] sm:$0x2]   ;;  %v345_v18 = vld [vmem:[%s697_s0 + $0x38] sm:$0x2]   ;;  %v347_v20 = vld [vmem:[%s697_s0 + $0x37] sm:$0x2]  }
   0x7   :  { %v64_v21 = vsel %vm5_vm0, %v343_v16, %v342_v15  ;;  %v74_v22 = vsel %vm5_vm0, %v345_v18, %v344_v17  ;;  %v84_v23 = vsel %vm5_vm0, %v347_v20, %v346_v19  ;;  %s432_s15 = smov 100   ;;  %s433_s16 = smov 96   ;;  %v348_v24 = vld [vmem:[%s697_s0 + $0x17] sm:$0x1]   ;;  %v350_v26 = vld [vmem:[%s697_s0 + $0x16] sm:$0x1]  }
   0x8   :  { %v349_v25 = vld [vmem:[%s697_s0 + $0x36] sm:$0x2]   ;;  %v351_v27 = vld [vmem:[%s697_s0 + $0x35] sm:$0x2]   ;;  %v352_v28 = vld [vmem:[%s697_s0 + $0x15] sm:$0x1]  }
   0x9   :  { %v353_v29 = vld [vmem:[%s697_s0 + $0x34] sm:$0x2]   ;;  %v94_v30 = vsel %vm5_vm0, %v349_v25, %v348_v24  ;;  %v104_v31 = vsel %vm5_vm0, %v351_v27, %v350_v26  ;;  %s436_s2 = smov 84   ;;  %v354_v33 = vld [vmem:[%s697_s0 + $0x14] sm:$0x1]   ;;  %s439_s17 = smov 72  }
   0xa   :  { %v114_v32 = vsel %vm5_vm0, %v353_v29, %v352_v28  ;;  %v355_v34 = vld [vmem:[%s697_s0 + $0x33] sm:$0x2]   ;;  %v356_v35 = vld [vmem:[%s697_s0 + $0x13] sm:$0x1]   ;;  %v358_v37 = vld [vmem:[%s697_s0 + $0x12] sm:$0x1]  }
   0xb   :  { %v357_v36 = vld [vmem:[%s697_s0 + $0x32] sm:$0x2]   ;;  %v359_v38 = vld [vmem:[%s697_s0 + $0x31] sm:$0x2]   ;;  %v124_v39 = vsel %vm5_vm0, %v355_v34, %v354_v33  ;;  %v360_v42 = vld [vmem:[%s697_s0 + $0x11] sm:$0x1]  }
   0xc   :  { %25 = vrot.lane.b32.xlu0 %v24_v10, %s429_s29  ;;  %45 = vrot.lane.b32.xlu1 %v44_v13, %s430_s30  ;;  %s434_s29 = smov 92   ;;  %s435_s30 = smov 88   ;;  %v134_v40 = vsel %vm5_vm0, %v357_v36, %v356_v35  ;;  %v144_v41 = vsel %vm5_vm0, %v359_v38, %v358_v37  ;;  %v361_v43 = vld [vmem:[%s697_s0 + $0x30] sm:$0x2]   ;;  %v362_v44 = vld [vmem:[%s697_s0 + $0x10] sm:$0x1]  }
   0xd   :  { %v363_v45 = vld [vmem:[%s697_s0 + $0x2f] sm:$0x2]   ;;  %v364_v46 = vld [vmem:[%s697_s0 + $0xf] sm:$0x1]   ;;  %v154_v48 = vsel %vm5_vm0, %v361_v43, %v360_v42  ;;  %s442_s3 = smov 60   ;;  %s445_s18 = smov 48  }
   0xe   :  { %65 = vrot.lane.b32.xlu2 %v64_v21, %s431_s14  ;;  %v365_v47 = vld [vmem:[%s697_s0 + $0x2e] sm:$0x2]   ;;  %v164_v49 = vsel %vm5_vm0, %v363_v45, %v362_v44  ;;  %v366_v51 = vld [vmem:[%s697_s0 + $0xe] sm:$0x1]   ;;  %v368_v53 = vld [vmem:[%s697_s0 + $0xd] sm:$0x1]  }
   0xf   :  { %v174_v50 = vsel %vm5_vm0, %v365_v47, %v364_v46  ;;  %v367_v52 = vld [vmem:[%s697_s0 + $0x2d] sm:$0x2]   ;;  %v369_v54 = vld [vmem:[%s697_s0 + $0x2c] sm:$0x2]   ;;  %v370_v55 = vld [vmem:[%s697_s0 + $0xc] sm:$0x1]  }
  0x10   :  { %v371_v56 = vld [vmem:[%s697_s0 + $0x2b] sm:$0x2]   ;;  %v184_v57 = vsel %vm5_vm0, %v367_v52, %v366_v51  ;;  %v194_v58 = vsel %vm5_vm0, %v369_v54, %v368_v53  ;;  %v372_v60 = vld [vmem:[%s697_s0 + $0xb] sm:$0x1]   ;;  %v374_v62 = vld [vmem:[%s697_s0 + $0xa] sm:$0x1]  }
  0x11   :  { %v204_v59 = vsel %vm5_vm0, %v371_v56, %v370_v55  ;;  %v373_v61 = vld [vmem:[%s697_s0 + $0x2a] sm:$0x2]   ;;  %v375_v63 = vld [vmem:[%s697_s0 + $0x29] sm:$0x2]   ;;  %v376_v0 = vld [vmem:[%s697_s0 + $0x9] sm:$0x1]  }
  0x12   :  { %v377_v1 = vld [vmem:[%s697_s0 + $0x28] sm:$0x2]   ;;  %v214_v2 = vsel %vm5_vm0, %v373_v61, %v372_v60  ;;  %v224_v3 = vsel %vm5_vm0, %v375_v63, %v374_v62  ;;  %s448_s4 = smov 36   ;;  %v378_v5 = vld [vmem:[%s697_s0 + $0x8] sm:$0x1]   ;;  %s451_s19 = smov 24  }
  0x13   :  { %v234_v4 = vsel %vm5_vm0, %v377_v1, %v376_v0  ;;  %v379_v6 = vld [vmem:[%s697_s0 + $0x27] sm:$0x2]   ;;  %v380_v7 = vld [vmem:[%s697_s0 + $0x7] sm:$0x1]   ;;  %v382_v9 = vld [vmem:[%s697_s0 + $0x6] sm:$0x1]  }
  0x14   :  { %75 = vrot.lane.b32.xlu0 %v74_v22, %s432_s15  ;;  %85 = vrot.lane.b32.xlu1 %v84_v23, %s433_s16  ;;  %s437_s15 = smov 80   ;;  %s438_s16 = smov 76   ;;  %v381_v8 = vld [vmem:[%s697_s0 + $0x26] sm:$0x2]   ;;  %v383_v10 = vld [vmem:[%s697_s0 + $0x25] sm:$0x2]   ;;  %v244_v11 = vsel %vm5_vm0, %v379_v6, %v378_v5 }
  0x15   :  { %v254_v12 = vsel %vm5_vm0, %v381_v8, %v380_v7  ;;  %v264_v13 = vsel %vm5_vm0, %v383_v10, %v382_v9  ;;  %v384_v14 = vld [vmem:[%s697_s0 + $0x5] sm:$0x1]   ;;  %v386_v16 = vld [vmem:[%s697_s0 + $0x4] sm:$0x1]   ;;  %v388_v18 = vld [vmem:[%s697_s0 + $0x3] sm:$0x1]  }
  0x16   :  { %95 = vrot.lane.b32.xlu2 %v94_v30, %s434_s29  ;;  %v385_v15 = vld [vmem:[%s697_s0 + $0x24] sm:$0x2]   ;;  %v387_v17 = vld [vmem:[%s697_s0 + $0x23] sm:$0x2]   ;;  %v389_v19 = vld [vmem:[%s697_s0 + $0x22] sm:$0x2]  }
  0x17   :  { %v274_v20 = vsel %vm5_vm0, %v385_v15, %v384_v14  ;;  %v284_v21 = vsel %vm5_vm0, %v387_v17, %v386_v16  ;;  %v294_v22 = vsel %vm5_vm0, %v389_v19, %v388_v18  ;;  %s454_s5 = smov 12   ;;  %v390_v23 = vld [vmem:[%s697_s0 + $0x2] sm:$0x1]   ;;  %v392_v25 = vld [vmem:[%s697_s0 + $0x1] sm:$0x1]   ;;  %s455_s14 = smov 8  }
  0x18   :  { %v391_v24 = vld [vmem:[%s697_s0 + $0x21] sm:$0x2]   ;;  %v393_v26 = vld [vmem:[%s697_s0 + $0x20] sm:$0x2]   ;;  %v2_v29 = vld [vmem:[%s697_s0] sm:$0x1]  }
  0x19   :  { %v304_v27 = vsel %vm5_vm0, %v391_v24, %v390_v23  ;;  %v314_v28 = vsel %vm5_vm0, %v393_v26, %v392_v25  ;;  %v331_v30 = vld [vmem:[%s697_s0 + $0x1f] sm:$0x2]   ;;  %vm37_vm4 = vcmask 982944   ;;  %vm47_vm5 = vcmask 950144  }
  0x1a   :  { %vm57_vm6 = vcmask 917344   ;;  %vm67_vm7 = vcmask 884544   ;;  %vm77_vm8 = vcmask 851744   ;;  %vm87_vm9 = vcmask 818944  }
  0x1b   :  { %vm97_vm10 = vcmask 786144   ;;  %vm107_vm11 = vcmask 753344   ;;  %vm117_vm12 = vcmask 720544   ;;  %vm127_vm13 = vcmask 687744  }
  0x1c   :  { %105 = vrot.lane.b32.xlu0 %v104_v31, %s435_s30  ;;  %115 = vrot.lane.b32.xlu1 %v114_v32, %s436_s2  ;;  %s440_s30 = smov 68   ;;  %s441_s2 = smov 64   ;;  %v6_v31 = vsel %vm5_vm0, %v331_v30, %v2_v29  ;;  %vm137_vm14 = vcmask 654944   ;;  %vm147_vm15 = vcmask 622144   ;;  %vm157_vm0 = vcmask 589344  }
  0x1d   :  { %8 = vst.msk [vmem:[#allocation0] ss:$8 sm:$0x3] %vm7_vm1, %v6_v31   ;;  %vm167_vm1 = vcmask 556544  }
  0x1e   :  { %125 = vrot.lane.b32.xlu2 %v124_v39, %s437_s15  ;;  %s456_s15 = smov 4  }
  0x24   :  { %135 = vrot.lane.b32.xlu0 %v134_v40, %s438_s16  ;;  %145 = vrot.lane.b32.xlu1 %v144_v41, %s439_s17  ;;  %s443_s16 = smov 56   ;;  %s444_s17 = smov 52  }
  0x26   :  { %155 = vrot.lane.b32.xlu2 %v154_v48, %s440_s30 }
  0x2c   :  { %165 = vrot.lane.b32.xlu0 %v164_v49, %s441_s2  ;;  %175 = vrot.lane.b32.xlu1 %v174_v50, %s442_s3  ;;  %s446_s2 = smov 44   ;;  %s447_s3 = smov 40  }
  0x2e   :  { %185 = vrot.lane.b32.xlu2 %v184_v57, %s443_s16 }
  0x34   :  { %195 = vrot.lane.b32.xlu0 %v194_v58, %s444_s17  ;;  %205 = vrot.lane.b32.xlu1 %v204_v59, %s445_s18  ;;  %s449_s17 = smov 32   ;;  %s450_s18 = smov 28  }
  0x36   :  { %215 = vrot.lane.b32.xlu2 %v214_v2, %s446_s2 }
  0x3c   :  { %225 = vrot.lane.b32.xlu0 %v224_v3, %s447_s3  ;;  %235 = vrot.lane.b32.xlu1 %v234_v4, %s448_s4  ;;  %s452_s3 = smov 20   ;;  %s453_s4 = smov 16  }
  0x3e   :  { %245 = vrot.lane.b32.xlu2 %v244_v11, %s449_s17 }
  0x44   :  { %255 = vrot.lane.b32.xlu0 %v254_v12, %s450_s18  ;;  %265 = vrot.lane.b32.xlu1 %v264_v13, %s451_s19 }
  0x46   :  { %275 = vrot.lane.b32.xlu2 %v274_v20, %s452_s3 }
  0x4c   :  { %285 = vrot.lane.b32.xlu0 %v284_v21, %s453_s4  ;;  %295 = vrot.lane.b32.xlu1 %v294_v22, %s454_s5 }
  0x4e   :  { %305 = vrot.lane.b32.xlu2 %v304_v27, %s455_s14 }
  0x54   :  { %315 = vrot.lane.b32.xlu0 %v314_v28, %s456_s15 }
  0x60   :  { %v56_v32 = vpop.permute.xlu2 %55  }
  0x68   :  { %v66_v33 = vpop.permute.xlu2 %65  }
  0x70   :  { %v96_v34 = vpop.permute.xlu2 %95  }
  0x76   :  { %v16_v35 = vpop.permute.xlu0 %15   ;;  %v36_v36 = vpop.permute.xlu1 %35  }
  0x77   :  { %18 = vst.msk [vmem:[#allocation0] ss:$8 sm:$0x3] %vm17_vm2, %v16_v35   ;;  %vm177_vm2 = vcmask 523744  }
  0x78   :  { %v126_v37 = vpop.permute.xlu2 %125  }
  0x7e   :  { %v26_v38 = vpop.permute.xlu0 %25   ;;  %v46_v39 = vpop.permute.xlu1 %45  }
  0x7f   :  { %28 = vst.msk [vmem:[#allocation0] ss:$8 sm:$0x3] %vm27_vm3, %v26_v38   ;;  %vm187_vm3 = vcmask 490944  }
  0x80   :  { %38 = vst.msk [vmem:[#allocation0] ss:$8 sm:$0x3] %vm37_vm4, %v36_v36   ;;  %v156_v40 = vpop.permute.xlu2 %155   ;;  %vm197_vm4 = vcmask 458144  }
  0x81   :  { %48 = vst.msk [vmem:[#allocation0] ss:$8 sm:$0x3] %vm47_vm5, %v46_v39   ;;  %vm207_vm5 = vcmask 425344  }
  0x82   :  { %58 = vst.msk [vmem:[#allocation0] ss:$8 sm:$0x3] %vm57_vm6, %v56_v32   ;;  %vm217_vm6 = vcmask 392544  }
  0x83   :  { %68 = vst.msk [vmem:[#allocation0] ss:$8 sm:$0x3] %vm67_vm7, %v66_v33   ;;  %vm227_vm7 = vcmask 359744  }
  0x86   :  { %v76_v41 = vpop.permute.xlu0 %75   ;;  %v86_v42 = vpop.permute.xlu1 %85  }
  0x87   :  { %78 = vst.msk [vmem:[#allocation0] ss:$8 sm:$0x3] %vm77_vm8, %v76_v41   ;;  %vm237_vm8 = vcmask 326944  }
  0x88   :  { %88 = vst.msk [vmem:[#allocation0] ss:$8 sm:$0x3] %vm87_vm9, %v86_v42   ;;  %v186_v43 = vpop.permute.xlu2 %185   ;;  %vm247_vm9 = vcmask 294144  }
  0x89   :  { %98 = vst.msk [vmem:[#allocation0] ss:$8 sm:$0x3] %vm97_vm10, %v96_v34   ;;  %vm257_vm10 = vcmask 261344  }
  0x8e   :  { %v106_v44 = vpop.permute.xlu0 %105   ;;  %v116_v45 = vpop.permute.xlu1 %115  }
  0x8f   :  { %108 = vst.msk [vmem:[#allocation0] ss:$8 sm:$0x3] %vm107_vm11, %v106_v44   ;;  %vm267_vm11 = vcmask 228544  }
  0x90   :  { %118 = vst.msk [vmem:[#allocation0] ss:$8 sm:$0x3] %vm117_vm12, %v116_v45   ;;  %v216_v46 = vpop.permute.xlu2 %215   ;;  %vm277_vm12 = vcmask 195744  }
  0x91   :  { %128 = vst.msk [vmem:[#allocation0] ss:$8 sm:$0x3] %vm127_vm13, %v126_v37   ;;  %vm287_vm13 = vcmask 162944  }
  0x96   :  { %v136_v47 = vpop.permute.xlu0 %135   ;;  %v146_v48 = vpop.permute.xlu1 %145  }
  0x97   :  { %138 = vst.msk [vmem:[#allocation0] ss:$8 sm:$0x3] %vm137_vm14, %v136_v47   ;;  %vm297_vm14 = vcmask 130144  }
  0x98   :  { %148 = vst.msk [vmem:[#allocation0] ss:$8 sm:$0x3] %vm147_vm15, %v146_v48   ;;  %v246_v49 = vpop.permute.xlu2 %245   ;;  %vm307_vm15 = vcmask 97344  }
  0x99   :  { %158 = vst.msk [vmem:[#allocation0] ss:$8 sm:$0x3] %vm157_vm0, %v156_v40   ;;  %vm317_vm0 = vcmask 64544  }
  0x9e   :  { %v166_v50 = vpop.permute.xlu0 %165   ;;  %v176_v51 = vpop.permute.xlu1 %175  }
  0x9f   :  { %168 = vst.msk [vmem:[#allocation0] ss:$8 sm:$0x3] %vm167_vm1, %v166_v50  }
  0xa0   :  { %178 = vst.msk [vmem:[#allocation0] ss:$8 sm:$0x3] %vm177_vm2, %v176_v51   ;;  %v276_v52 = vpop.permute.xlu2 %275  }
  0xa1   :  { %188 = vst.msk [vmem:[#allocation0] ss:$8 sm:$0x3] %vm187_vm3, %v186_v43  }
  0xa6   :  { %v196_v53 = vpop.permute.xlu0 %195   ;;  %v206_v54 = vpop.permute.xlu1 %205  }
  0xa7   :  { %198 = vst.msk [vmem:[#allocation0] ss:$8 sm:$0x3] %vm197_vm4, %v196_v53  }
  0xa8   :  { %208 = vst.msk [vmem:[#allocation0] ss:$8 sm:$0x3] %vm207_vm5, %v206_v54   ;;  %v306_v55 = vpop.permute.xlu2 %305  }
  0xa9   :  { %218 = vst.msk [vmem:[#allocation0] ss:$8 sm:$0x3] %vm217_vm6, %v216_v46  }
  0xae   :  { %v226_v56 = vpop.permute.xlu0 %225   ;;  %v236_v57 = vpop.permute.xlu1 %235  }
  0xaf   :  { %228 = vst.msk [vmem:[#allocation0] ss:$8 sm:$0x3] %vm227_vm7, %v226_v56  }
  0xb0   :  { %238 = vst.msk [vmem:[#allocation0] ss:$8 sm:$0x3] %vm237_vm8, %v236_v57  }
  0xb1   :  { %248 = vst.msk [vmem:[#allocation0] ss:$8 sm:$0x3] %vm247_vm9, %v246_v49  }
  0xb6   :  { %v256_v58 = vpop.permute.xlu0 %255   ;;  %v266_v59 = vpop.permute.xlu1 %265  }
  0xb7   :  { %258 = vst.msk [vmem:[#allocation0] ss:$8 sm:$0x3] %vm257_vm10, %v256_v58  }
  0xb8   :  { %268 = vst.msk [vmem:[#allocation0] ss:$8 sm:$0x3] %vm267_vm11, %v266_v59  }
  0xb9   :  { %278 = vst.msk [vmem:[#allocation0] ss:$8 sm:$0x3] %vm277_vm12, %v276_v52  }
  0xbe   :  { %v286_v60 = vpop.permute.xlu0 %285   ;;  %v296_v61 = vpop.permute.xlu1 %295  }
  0xbf   :  { %288 = vst.msk [vmem:[#allocation0] ss:$8 sm:$0x3] %vm287_vm13, %v286_v60  }
  0xc0   :  { %298 = vst.msk [vmem:[#allocation0] ss:$8 sm:$0x3] %vm297_vm14, %v296_v61  }
  0xc1   :  { %308 = vst.msk [vmem:[#allocation0] ss:$8 sm:$0x3] %vm307_vm15, %v306_v55  }
  0xc6   :  { %v316_v62 = vpop.permute.xlu0 %315  }
  0xc7   :  { %318 = vst.msk [vmem:[#allocation0] ss:$8 sm:$0x3] %vm317_vm0, %v316_v62  }
  0xce   :  { %v321_v63 = vld [vmem:[#allocation0] sm:$0x1]  ;;  %v326_v0 = vld [vmem:[#allocation0 + $0x8] sm:$0x1] }
  0xcf   :  { %324 = vst [vmem:[%s698_s1] sm:$0x1] %v321_v63 }
  0xd0   :  { %394 = vst [vmem:[%s698_s1 + $0x1] sm:$0x1] %v326_v0 }

// kernel: tile.13
= control target key start
LH: loop header
LB: loop body
LE: loop exit
PB: predicated region body
PF: predicated region fallthrough
CT: control target
= control target key end

     0   :  { %s28_s0 = inlined_call_operand.vmem [shape: f32[8], index: 0, kind: input, shape index: {}]   ;;  %s29_s1 = inlined_call_operand.vmem [shape: f32[16,8], index: 1, kind: output, shape index: {}]  }
   0x1   :  { %v4_v0 = vld [vmem:[%s28_s0] ss:$0 sm:$0xff] }
   0x2   :  { %5 = vst [vmem:[%s29_s1] sm:$0xff] %v4_v0 }
   0x3   :  { %8 = vst [vmem:[%s29_s1 + $0x8] sm:$0xff] %v4_v0 }

// kernel: tile.14
= control target key start
LH: loop header
LB: loop body
LE: loop exit
PB: predicated region body
PF: predicated region fallthrough
CT: control target
= control target key end

     0   :  { %s131_s10 = smov 120   ;;  %s132_s11 = smov 104   ;;  %vm3_vm0 = vcmask 64512   ;;  %vm9_vm1 = vcmask 1048512   ;;  %vm15_vm2 = vcmask 982912   ;;  %vm21_vm3 = vcmask 917312   ;;  %s207_s0 = inlined_call_operand.vmem [shape: f32[16,8], index: 0, kind: input, shape index: {}]   ;;  %s208_s1 = inlined_call_operand.vmem [shape: f32[1,128], index: 1, kind: output, shape index: {}]  }
   0x1   :  { %v101_v0 = vld [vmem:[%s207_s0 + $0xf] sm:$0x1]   ;;  %v103_v1 = vld [vmem:[%s207_s0 + $0xd] sm:$0x1]   ;;  %v105_v2 = vld [vmem:[%s207_s0 + $0xb] sm:$0x1]  }
   0x2   :  { %7 = vrot.lane.b32.xlu0 %v101_v0, %s131_s10  ;;  %19 = vrot.lane.b32.xlu1 %v103_v1, %s132_s11  ;;  %s133_s14 = smov 88   ;;  %v102_v3 = vld [vmem:[%s207_s0 + $0xe] sm:$0x1]   ;;  %v104_v4 = vld [vmem:[%s207_s0 + $0xc] sm:$0x1]   ;;  %s134_s19 = smov 112  }
   0x3   :  { %31 = vrot.lane.b32.xlu2 %v105_v2, %s133_s14  ;;  %s135_s20 = smov 96   ;;  %v106_v5 = vld [vmem:[%s207_s0 + $0xa] sm:$0x1]   ;;  %s136_s23 = smov 80   ;;  %v107_v6 = vld [vmem:[%s207_s0 + $0x9] sm:$0x1]  }
   0x4   :  { %v108_v7 = vld [vmem:[%s207_s0 + $0x8] sm:$0x1]   ;;  %s137_s28 = smov 72   ;;  %s138_s29 = smov 64   ;;  %v109_v8 = vld [vmem:[%s207_s0 + $0x7] sm:$0x1]  }
   0x5   :  { %s139_s3 = smov 56   ;;  %v110_v9 = vld [vmem:[%s207_s0 + $0x6] sm:$0x1]   ;;  %v111_v10 = vld [vmem:[%s207_s0 + $0x5] sm:$0x1]   ;;  %s140_s8 = smov 48  }
   0x6   :  { %s141_s9 = smov 40   ;;  %v112_v11 = vld [vmem:[%s207_s0 + $0x4] sm:$0x1]   ;;  %s142_s12 = smov 32   ;;  %v113_v12 = vld [vmem:[%s207_s0 + $0x3] sm:$0x1]  }
   0x7   :  { %v114_v13 = vld [vmem:[%s207_s0 + $0x2] sm:$0x1]   ;;  %s143_s17 = smov 24   ;;  %s144_s18 = smov 16   ;;  %v115_v14 = vld [vmem:[%s207_s0 + $0x1] sm:$0x1]  }
   0x8   :  { %s145_s21 = smov 8   ;;  %v2_v15 = vld [vmem:[%s207_s0] sm:$0x1]   ;;  %vm27_vm4 = vcmask 851712   ;;  %vm33_vm5 = vcmask 786112   ;;  %vm39_vm6 = vcmask 720512  }
   0x9   :  { %4 = vst.msk [vmem:[#allocation0] sm:$0x1] %vm3_vm0, %v2_v15   ;;  %vm45_vm7 = vcmask 654912   ;;  %vm51_vm8 = vcmask 589312   ;;  %vm57_vm9 = vcmask 523712   ;;  %vm63_vm10 = vcmask 458112  }
   0xa   :  { %13 = vrot.lane.b32.xlu0 %v102_v3, %s134_s19  ;;  %25 = vrot.lane.b32.xlu1 %v104_v4, %s135_s20  ;;  %vm69_vm11 = vcmask 392512   ;;  %vm75_vm12 = vcmask 326912   ;;  %vm81_vm13 = vcmask 261312   ;;  %vm87_vm14 = vcmask 195712  }
   0xb   :  { %37 = vrot.lane.b32.xlu2 %v106_v5, %s136_s23  ;;  %vm93_vm15 = vcmask 130112  }
  0x12   :  { %43 = vrot.lane.b32.xlu0 %v107_v6, %s137_s28  ;;  %49 = vrot.lane.b32.xlu1 %v108_v7, %s138_s29 }
  0x13   :  { %55 = vrot.lane.b32.xlu2 %v109_v8, %s139_s3 }
  0x1a   :  { %61 = vrot.lane.b32.xlu0 %v110_v9, %s140_s8  ;;  %67 = vrot.lane.b32.xlu1 %v111_v10, %s141_s9 }
  0x1b   :  { %73 = vrot.lane.b32.xlu2 %v112_v11, %s142_s12 }
  0x22   :  { %79 = vrot.lane.b32.xlu0 %v113_v12, %s143_s17  ;;  %85 = vrot.lane.b32.xlu1 %v114_v13, %s144_s18 }
  0x23   :  { %91 = vrot.lane.b32.xlu2 %v115_v14, %s145_s21 }
  0x5d   :  { %v32_v16 = vpop.permute.xlu2 %31  }
  0x65   :  { %v38_v17 = vpop.permute.xlu2 %37  }
  0x6d   :  { %v56_v18 = vpop.permute.xlu2 %55  }
  0x74   :  { %v8_v19 = vpop.permute.xlu0 %7   ;;  %v20_v20 = vpop.permute.xlu1 %19  }
  0x75   :  { %10 = vst.msk [vmem:[#allocation0] sm:$0x1] %vm9_vm1, %v8_v19   ;;  %v74_v21 = vpop.permute.xlu2 %73  }
  0x7c   :  { %v14_v22 = vpop.permute.xlu0 %13   ;;  %v26_v23 = vpop.permute.xlu1 %25  }
  0x7d   :  { %16 = vst.msk [vmem:[#allocation0] sm:$0x1] %vm15_vm2, %v14_v22   ;;  %v92_v24 = vpop.permute.xlu2 %91  }
  0x7e   :  { %22 = vst.msk [vmem:[#allocation0] sm:$0x1] %vm21_vm3, %v20_v20  }
  0x7f   :  { %28 = vst.msk [vmem:[#allocation0] sm:$0x1] %vm27_vm4, %v26_v23  }
  0x80   :  { %34 = vst.msk [vmem:[#allocation0] sm:$0x1] %vm33_vm5, %v32_v16  }
  0x81   :  { %40 = vst.msk [vmem:[#allocation0] sm:$0x1] %vm39_vm6, %v38_v17  }
  0x84   :  { %v44_v25 = vpop.permute.xlu0 %43   ;;  %v50_v26 = vpop.permute.xlu1 %49  }
  0x85   :  { %46 = vst.msk [vmem:[#allocation0] sm:$0x1] %vm45_vm7, %v44_v25  }
  0x86   :  { %52 = vst.msk [vmem:[#allocation0] sm:$0x1] %vm51_vm8, %v50_v26  }
  0x87   :  { %58 = vst.msk [vmem:[#allocation0] sm:$0x1] %vm57_vm9, %v56_v18  }
  0x8c   :  { %v62_v27 = vpop.permute.xlu0 %61   ;;  %v68_v28 = vpop.permute.xlu1 %67  }
  0x8d   :  { %64 = vst.msk [vmem:[#allocation0] sm:$0x1] %vm63_vm10, %v62_v27  }
  0x8e   :  { %70 = vst.msk [vmem:[#allocation0] sm:$0x1] %vm69_vm11, %v68_v28  }
  0x8f   :  { %76 = vst.msk [vmem:[#allocation0] sm:$0x1] %vm75_vm12, %v74_v21  }
  0x94   :  { %v80_v29 = vpop.permute.xlu0 %79   ;;  %v86_v30 = vpop.permute.xlu1 %85  }
  0x95   :  { %82 = vst.msk [vmem:[#allocation0] sm:$0x1] %vm81_vm13, %v80_v29  }
  0x96   :  { %88 = vst.msk [vmem:[#allocation0] sm:$0x1] %vm87_vm14, %v86_v30  }
  0x97   :  { %94 = vst.msk [vmem:[#allocation0] sm:$0x1] %vm93_vm15, %v92_v24  }
  0x9e   :  { %v97_v31 = vld [vmem:[#allocation0] sm:$0x1] }
  0x9f   :  { %100 = vst [vmem:[%s208_s1] sm:$0x1] %v97_v31 }

// kernel: decoder_forward.1
= control target key start
LH: loop header
LB: loop body
LE: loop exit
PB: predicated region body
PF: predicated region fallthrough
CT: control target
= control target key end

     0   :  { %s666_s18 = smov 0   ;;  %s984_s0 = inlined_call_operand.vmem [shape: f32[2,16,64], index: 0, kind: input, shape index: {}]   ;;  %s985_s1 = inlined_call_operand.vmem [shape: f32[192,128], index: 1, kind: input, shape index: {}]   ;;  %s986_s2 = inlined_call_operand.vmem [shape: f32[1,128], index: 2, kind: input, shape index: {}]   ;;  %s987_s3 = inlined_call_operand.vmem [shape: f32[256,256], index: 3, kind: input, shape index: {}]   ;;  %s988_s4 = inlined_call_operand.vmem [shape: f32[1,256], index: 4, kind: input, shape index: {}]   ;;  %s989_s5 = inlined_call_operand.vmem [shape: f32[2,16,256], index: 5, kind: output, shape index: {}]  }
   0x1 LB: > { %s584_s19 = sadd.s32 4294967295, %s633_s18   ;;  %p588_p0 = scmp.ge.s32.totalorder %s633_s18, 1  ;;  %s633_s18 = sphi %s666_s18, %s15_s18  }
   0x2   : > { %p187_p1 = scmp.lt.s32.totalorder %s633_s18, 3 }
   0x4   : > { %p188_p2 = pnand %p588_p0, %p187_p1 }
   0x5   : > { %p215_p3 = scmp.lt.s32.totalorder (!%p188_p2), %s584_s19, 1  ;;  %s635_s15 = smov (!%p188_p2), 64  }
   0x6   : > { %191 = sbr.rel (%p188_p2) target bundleno = 426 (0x1aa), region = 40 }
   0xb   : > { %v276_v0 = vld [vmem:[%s985_s1 + $0x78] sm:$0xff]  ;;  %v275_v1 = vld [vmem:[%s985_s1 + $0x70] sm:$0xff]  ;;  %s991_s19 = smov (!%p215_p3, %s584_s19), 1  ;;  %v274_v2 = vld [vmem:[%s985_s1 + $0x68] sm:$0xff]  ;;  %vm236_vm0 = vcmask 1046528   ;;  %vm243_vm1 = vcmask 523264  }
   0xc   : > { %295 = vmatpush.msra.mxu0 %v276_v0  ;;  %v284_v3 = vld [vmem:[%s985_s1 + $0xb8] sm:$0xff]  ;;  %s597_s28 = sshll.u32 %s991_s19, 4  ;;  %v273_v4 = vld [vmem:[%s985_s1 + $0x60] sm:$0xff]  ;;  %v283_v5 = vld [vmem:[%s985_s1 + $0xb0] sm:$0xff]  ;;  %vm229_vm2 = vcmask 1040384   ;;  %vm252_vm3 = vcmask 1048064  }
   0xd   : > { %326 = vmatpush.msra.mxu1 %v284_v3  ;;  %s219_s10 = scalar_lea.vmem %s984_s0, %s597_s28  ;;  %v282_v6 = vld [vmem:[%s985_s1 + $0xa8] sm:$0xff]  ;;  %v272_v9 = vld [vmem:[%s985_s1 + $0x58] sm:$0xff]  ;;  %v271_v12 = vld [vmem:[%s985_s1 + $0x50] sm:$0xff]  ;;  %s598_s21 = sshll.u32 %s991_s19, 5 }
   0xe   : > { %296 = vmatpush.msra.mxu0 %v275_v1  ;;  %v225_v7 = vld [vmem:[%s219_s10] sm:$0xff]  ;;  %v226_v8 = vld [vmem:[%s219_s10 + $0x8] sm:$0xff]  ;;  %v268_v17 = vld [vmem:[%s985_s1 + $0x38] sm:$0xff]  ;;  %s224_s24 = scalar_lea.vmem %s989_s5, %s598_s21 }
   0xf   : > { %327 = vmatpush.msra.mxu1 %v283_v5  ;;  %246 = vrot.lane.b32.xlu0 %v225_v7, %s635_s15  ;;  %v237_v10 = vrot.slane %v225_v7, 1  ;;  %v238_v11 = vrot.slane %v226_v8, 1  ;;  %v270_v15 = vld [vmem:[%s985_s1 + $0x48] sm:$0xff]  ;;  %v269_v16 = vld [vmem:[%s985_s1 + $0x40] sm:$0xff]  ;;  %v267_v18 = vld [vmem:[%s985_s1 + $0x30] sm:$0xff]  ;;  %v230_v21 = vrot.slane %v225_v7, 7 }
  0x10   : > { %297 = vmatpush.msra.mxu0 %v274_v2  ;;  %v266_v19 = vld [vmem:[%s985_s1 + $0x28] sm:$0xff]  ;;  %v265_v20 = vld [vmem:[%s985_s1 + $0x20] sm:$0xff]  ;;  %v264_v23 = vld [vmem:[%s985_s1 + $0x18] sm:$0xff]  ;;  %v231_v27 = vrot.slane %v226_v8, 7 }
  0x11   : > { %328 = vmatpush.msra.mxu1 %v282_v6  ;;  %v242_v13 = vsel %vm236_vm0, %v238_v11, 0.0  ;;  %v239_v14 = vsel %vm236_vm0, %v237_v10, %v238_v11  ;;  %v235_v22 = vsel %vm229_vm2, 0.0, %v230_v21  ;;  %v281_v24 = vld [vmem:[%s985_s1 + $0xa0] sm:$0xff]  ;;  %v263_v25 = vld [vmem:[%s985_s1 + $0x10] sm:$0xff]  ;;  %v280_v26 = vld [vmem:[%s985_s1 + $0x98] sm:$0xff] }
  0x12   : > { %298 = vmatpush.msra.mxu0 %v273_v4  ;;  %256 = vst.msk [vmem:[#allocation2 + $0x18] sm:$0xff] %vm243_vm1, %v242_v13  ;;  %v262_v28 = vld [vmem:[%s985_s1 + $0x8] sm:$0xff]  ;;  %v279_v29 = vld [vmem:[%s985_s1 + $0x90] sm:$0xff]  ;;  %v261_v30 = vld [vmem:[%s985_s1] sm:$0xff]  ;;  %v232_v32 = vsel %vm229_vm2, %v230_v21, %v231_v27 }
  0x13   : > { %255 = vst.msk [vmem:[#allocation2 + $0x8] sm:$0xff] %vm243_vm1, %v239_v14  ;;  %329 = vmatpush.msra.mxu1 %v281_v24  ;;  %v278_v31 = vld [vmem:[%s985_s1 + $0x88] sm:$0xff]  ;;  %v277_v33 = vld [vmem:[%s985_s1 + $0x80] sm:$0xff]  ;;  %v389_v36 = vld [vmem:[%s987_s3 + $0xf0] sm:$0xff] }
  0x14   : > { %299 = vmatpush.msra.mxu0 %v272_v9  ;;  %244 = vst.msk [vmem:[#allocation2] sm:$0xff] %vm243_vm1, %v235_v22  ;;  %v387_v37 = vld [vmem:[%s987_s3 + $0xe0] sm:$0xff]  ;;  %429 = vmatpush.msra.mxu2 %v389_v36  ;;  %v385_v38 = vld [vmem:[%s987_s3 + $0xd0] sm:$0xff]  ;;  %v390_v39 = vld [vmem:[%s987_s3 + $0xf8] sm:$0xff] }
  0x15   : > { %330 = vmatpush.msra.mxu1 %v280_v26  ;;  %245 = vst.msk [vmem:[#allocation2 + $0x10] sm:$0xff] %vm243_vm1, %v232_v32  ;;  %v388_v40 = vld [vmem:[%s987_s3 + $0xe8] sm:$0xff]  ;;  %v383_v41 = vld [vmem:[%s987_s3 + $0xc0] sm:$0xff]  ;;  %v386_v42 = vld [vmem:[%s987_s3 + $0xd8] sm:$0xff] }
  0x16   : > { %300 = vmatpush.msra.mxu0 %v271_v12  ;;  %430 = vmatpush.msra.mxu2 %v387_v37  ;;  %v381_v43 = vld [vmem:[%s987_s3 + $0xb0] sm:$0xff]  ;;  %v384_v44 = vld [vmem:[%s987_s3 + $0xc8] sm:$0xff]  ;;  %v795_v46 = vld [vmem:[%s987_s3 + $0x1f8] sm:$0xff] }
  0x17   : > { %248 = vrot.lane.b32.xlu0 %v226_v8, %s635_s15  ;;  %331 = vmatpush.msra.mxu1 %v279_v29  ;;  %v421_v45 = vld [vmem:[%s987_s3 + $0x1f0] sm:$0xff]  ;;  %v379_v47 = vld [vmem:[%s987_s3 + $0xa0] sm:$0xff]  ;;  %v806_v49 = vld [vmem:[%s987_s3 + $0x1e8] sm:$0xff] }
  0x18   : > { %301 = vmatpush.msra.mxu0 %v270_v15  ;;  %431 = vmatpush.msra.mxu2 %v385_v38  ;;  %v419_v48 = vld [vmem:[%s987_s3 + $0x1e0] sm:$0xff]  ;;  %v382_v50 = vld [vmem:[%s987_s3 + $0xb8] sm:$0xff]  ;;  %v417_v51 = vld [vmem:[%s987_s3 + $0x1d0] sm:$0xff] }
  0x19   : > { %332 = vmatpush.msra.mxu1 %v278_v31  ;;  %v260_v35 = vld [vmem:[#allocation2 + $0x18] sm:$0xff]  ;;  %452 = vmatpush.msra.mxu3 %v421_v45  ;;  %v377_v52 = vld [vmem:[%s987_s3 + $0x90] sm:$0xff]  ;;  %v380_v54 = vld [vmem:[%s987_s3 + $0xa8] sm:$0xff] }
  0x1a   : > { %302 = vmatpush.msra.mxu0 %v269_v16  ;;  %v258_v34 = vld [vmem:[#allocation2 + $0x8] sm:$0xff]  ;;  %432 = vmatpush.msra.mxu2 %v383_v41  ;;  %v821_v53 = vld [vmem:[%s987_s3 + $0x1d8] sm:$0xff]  ;;  %v415_v55 = vld [vmem:[%s987_s3 + $0x1c0] sm:$0xff] }
  0x1b   : > { %333 = vmatpush.msra.mxu1 %v277_v33  ;;  %453 = vmatpush.msra.mxu3 %v419_v48  ;;  %v375_v56 = vld [vmem:[%s987_s3 + $0x80] sm:$0xff]  ;;  %v416_v57 = vld [vmem:[%s987_s3 + $0x1c8] sm:$0xff]  ;;  %v378_v58 = vld [vmem:[%s987_s3 + $0x98] sm:$0xff] }
  0x1c   : > { %303 = vmatpush.msra.mxu0 %v268_v17  ;;  %593 = vmatmul.msk.f32.vlgmr.msra.gmra.mxu1 %vm243_vm1, %v258_v34  ;;  %v413_v59 = vld [vmem:[%s987_s3 + $0x1b0] sm:$0xff]  ;;  %v414_v61 = vld [vmem:[%s987_s3 + $0x1b8] sm:$0xff]  ;;  %v376_v63 = vld [vmem:[%s987_s3 + $0x88] sm:$0xff] }
  0x1d   : > { %475 = vmatpush.msrb.mxu1 %v390_v39  ;;  %433 = vmatpush.msra.mxu2 %v381_v43  ;;  %v373_v60 = vld [vmem:[%s987_s3 + $0x70] sm:$0xff]  ;;  %v411_v0 = vld [vmem:[%s987_s3 + $0x1a0] sm:$0xff]  ;;  %v412_v2 = vld [vmem:[%s987_s3 + $0x1a8] sm:$0xff] }
  0x1e   : > { %304 = vmatpush.msra.mxu0 %v267_v18  ;;  %454 = vmatpush.msra.mxu3 %v417_v51  ;;  %v371_v1 = vld [vmem:[%s987_s3 + $0x60] sm:$0xff]  ;;  %v374_v3 = vld [vmem:[%s987_s3 + $0x78] sm:$0xff]  ;;  %v409_v4 = vld [vmem:[%s987_s3 + $0x190] sm:$0xff] }
  0x1f   : > { %476 = vmatpush.msrb.mxu1 %v388_v40  ;;  %434 = vmatpush.msra.mxu2 %v379_v47  ;;  %v369_v5 = vld [vmem:[%s987_s3 + $0x50] sm:$0xff]  ;;  %v410_v6 = vld [vmem:[%s987_s3 + $0x198] sm:$0xff]  ;;  %v372_v7 = vld [vmem:[%s987_s3 + $0x68] sm:$0xff] }
  0x20   : > { %305 = vmatpush.msra.mxu0 %v266_v19  ;;  %455 = vmatpush.msra.mxu3 %v415_v55  ;;  %v367_v8 = vld [vmem:[%s987_s3 + $0x40] sm:$0xff]  ;;  %v370_v9 = vld [vmem:[%s987_s3 + $0x58] sm:$0xff]  ;;  %v365_v10 = vld [vmem:[%s987_s3 + $0x30] sm:$0xff] }
  0x21   : > { %477 = vmatpush.msrb.mxu1 %v386_v42  ;;  %435 = vmatpush.msra.mxu2 %v377_v52  ;;  %v368_v13 = vld [vmem:[%s987_s3 + $0x48] sm:$0xff]  ;;  %v363_v14 = vld [vmem:[%s987_s3 + $0x20] sm:$0xff]  ;;  %v361_v15 = vld [vmem:[%s987_s3 + $0x10] sm:$0xff] }
  0x22   : > { %306 = vmatpush.msra.mxu0 %v265_v20  ;;  %456 = vmatpush.msra.mxu3 %v413_v59  ;;  %v359_v16 = vld [vmem:[%s987_s3] sm:$0xff]  ;;  %v366_v18 = vld [vmem:[%s987_s3 + $0x38] sm:$0xff]  ;;  %v408_v20 = vld [vmem:[%s987_s3 + $0x188] sm:$0xff] }
  0x23   : > { %478 = vmatpush.msrb.mxu1 %v384_v44  ;;  %436 = vmatpush.msra.mxu2 %v375_v56  ;;  %v407_v19 = vld [vmem:[%s987_s3 + $0x180] sm:$0xff]  ;;  %v364_v21 = vld [vmem:[%s987_s3 + $0x28] sm:$0xff]  ;;  %v405_v22 = vld [vmem:[%s987_s3 + $0x170] sm:$0xff] }
  0x24   : > { %307 = vmatpush.msra.mxu0 %v264_v23  ;;  %594 = vmatmul.msk.f32.gmra.mxu1 %vm243_vm1, %v260_v35  ;;  %v406_v23 = vld [vmem:[%s987_s3 + $0x178] sm:$0xff]  ;;  %v404_v26 = vld [vmem:[%s987_s3 + $0x168] sm:$0xff]  ;;  %v397_v32 = vld [vmem:[%s987_s3 + $0x130] sm:$0xff] }
  0x25   : > { %479 = vmatpush.msrb.mxu1 %v382_v50  ;;  %437 = vmatpush.msra.mxu2 %v373_v60  ;;  %v362_v24 = vld [vmem:[%s987_s3 + $0x18] sm:$0xff]  ;;  %v360_v27 = vld [vmem:[%s987_s3 + $0x8] sm:$0xff]  ;;  %v395_v34 = vld [vmem:[%s987_s3 + $0x120] sm:$0xff] }
  0x26   : > { %308 = vmatpush.msra.mxu0 %v263_v25  ;;  %457 = vmatpush.msra.mxu3 %v411_v0  ;;  %v403_v25 = vld [vmem:[%s987_s3 + $0x160] sm:$0xff]  ;;  %v402_v29 = vld [vmem:[%s987_s3 + $0x158] sm:$0xff]  ;;  %v400_v31 = vld [vmem:[%s987_s3 + $0x148] sm:$0xff] }
  0x27   : > { %480 = vmatpush.msrb.mxu1 %v380_v54  ;;  %438 = vmatpush.msra.mxu2 %v371_v1  ;;  %v398_v33 = vld [vmem:[%s987_s3 + $0x138] sm:$0xff]  ;;  %v396_v35 = vld [vmem:[%s987_s3 + $0x128] sm:$0xff]  ;;  %v393_v36 = vld [vmem:[%s987_s3 + $0x110] sm:$0xff] }
  0x28   : > { %309 = vmatpush.msra.mxu0 %v262_v28  ;;  %458 = vmatpush.msra.mxu3 %v409_v4  ;;  %v401_v28 = vld [vmem:[%s987_s3 + $0x150] sm:$0xff]  ;;  %v394_v37 = vld [vmem:[%s987_s3 + $0x118] sm:$0xff]  ;;  %v391_v38 = vld [vmem:[%s987_s3 + $0x100] sm:$0xff] }
  0x29   : > { %481 = vmatpush.msrb.mxu1 %v378_v58  ;;  %439 = vmatpush.msra.mxu2 %v369_v5  ;;  %v392_v39 = vld [vmem:[%s987_s3 + $0x108] sm:$0xff]  ;;  %v626_v40 = vld [vmem:[%s986_s2] ss:$0 sm:$0xff] }
  0x2a   : > { %310 = vmatpush.msra.mxu0 %v261_v30  ;;  %459 = vmatpush.msra.mxu3 %v407_v19  ;;  %v399_v30 = vld [vmem:[%s987_s3 + $0x140] sm:$0xff] }
  0x2b   : > { %482 = vmatpush.msrb.mxu1 %v376_v63  ;;  %440 = vmatpush.msra.mxu2 %v367_v8  ;;  %v423_v54 = vld [vmem:[%s988_s4] sm:$0x3] }
  0x2c   : > { %498 = vmatpush.msrb.mxu0 %v795_v46  ;;  %460 = vmatpush.msra.mxu3 %v405_v22  ;;  %v426_v55 = vperm.slane %v423_v54, 1  ;;  %v425_v60 = vperm.slane %v423_v54, 0 }
  0x2d   : > { %483 = vmatpush.msrb.mxu1 %v374_v3  ;;  %441 = vmatpush.msra.mxu2 %v365_v10 }
  0x2e   : > { %499 = vmatpush.msrb.mxu0 %v806_v49  ;;  %461 = vmatpush.msra.mxu3 %v403_v25 }
  0x2f   : > { %484 = vmatpush.msrb.mxu1 %v372_v7  ;;  %442 = vmatpush.msra.mxu2 %v363_v14 }
  0x30   : > { %500 = vmatpush.msrb.mxu0 %v821_v53  ;;  %462 = vmatpush.msra.mxu3 %v401_v28 }
  0x31   : > { %485 = vmatpush.msrb.mxu1 %v370_v9  ;;  %443 = vmatpush.msra.mxu2 %v361_v15 }
  0x32   : > { %501 = vmatpush.msrb.mxu0 %v416_v57  ;;  %463 = vmatpush.msra.mxu3 %v399_v30 }
  0x33   : > { %486 = vmatpush.msrb.mxu1 %v368_v13  ;;  %444 = vmatpush.msra.mxu2 %v359_v16 }
  0x34   : > { %502 = vmatpush.msrb.mxu0 %v414_v61  ;;  %464 = vmatpush.msra.mxu3 %v397_v32 }
  0x35   : > { %601 = vmatpush.msrb.mxu2 %v795_v46  ;;  %487 = vmatpush.msrb.mxu1 %v366_v18 }
  0x36   : > { %503 = vmatpush.msrb.mxu0 %v412_v2  ;;  %465 = vmatpush.msra.mxu3 %v395_v34 }
  0x37   : > { %602 = vmatpush.msrb.mxu2 %v806_v49  ;;  %488 = vmatpush.msrb.mxu1 %v364_v21 }
  0x38   : > { %504 = vmatpush.msrb.mxu0 %v410_v6  ;;  %466 = vmatpush.msra.mxu3 %v393_v36 }
  0x39   : > { %603 = vmatpush.msrb.mxu2 %v821_v53  ;;  %489 = vmatpush.msrb.mxu1 %v362_v24 }
  0x3a   : > { %505 = vmatpush.msrb.mxu0 %v408_v20  ;;  %467 = vmatpush.msra.mxu3 %v391_v38 }
  0x3b   : > { %604 = vmatpush.msrb.mxu2 %v416_v57  ;;  %490 = vmatpush.msrb.mxu1 %v360_v27 }
  0x3c   : > { %506 = vmatpush.msrb.mxu0 %v406_v23 }
  0x3d   : > { %605 = vmatpush.msrb.mxu2 %v414_v61 }
  0x3e   : > { %507 = vmatpush.msrb.mxu0 %v404_v26 }
  0x3f   : > { %606 = vmatpush.msrb.mxu2 %v412_v2 }
  0x40   : > { %508 = vmatpush.msrb.mxu0 %v402_v29 }
  0x41   : > { %607 = vmatpush.msrb.mxu2 %v410_v6 }
  0x42   : > { %509 = vmatpush.msrb.mxu0 %v400_v31 }
  0x43   : > { %608 = vmatpush.msrb.mxu2 %v408_v20 }
  0x44   : > { %510 = vmatpush.msrb.mxu0 %v398_v33 }
  0x45   : > { %609 = vmatpush.msrb.mxu2 %v406_v23 }
  0x46   : > { %511 = vmatpush.msrb.mxu0 %v396_v35 }
  0x47   : > { %610 = vmatpush.msrb.mxu2 %v404_v26 }
  0x48   : > { %512 = vmatpush.msrb.mxu0 %v394_v37 }
  0x49   : > { %611 = vmatpush.msrb.mxu2 %v402_v29 }
  0x4a   : > { %513 = vmatpush.msrb.mxu0 %v392_v39 }
  0x4b   : > { %612 = vmatpush.msrb.mxu2 %v400_v31 }
  0x4d   : > { %613 = vmatpush.msrb.mxu2 %v398_v33 }
  0x4f   : > { %614 = vmatpush.msrb.mxu2 %v396_v35 }
  0x51   : > { %615 = vmatpush.msrb.mxu2 %v394_v37 }
  0x53   : > { %616 = vmatpush.msrb.mxu2 %v392_v39 }
  0x81   : > { %v247_v62 = vpop.permute.xlu0 %246 }
  0x82   : > { %253 = vst.msk [vmem:[#allocation2] sm:$0xff] %vm252_vm3, %v247_v62 }
  0x89   : > { %v249_v11 = vpop.permute.xlu0 %248  ;;  %v257_v12 = vld [vmem:[#allocation2] sm:$0xff] }
  0x8a   : > { %254 = vst.msk [vmem:[#allocation2 + $0x10] sm:$0xff] %vm252_vm3, %v249_v11  ;;  %311 = vmatmul.f32.vlgmr.msra.gmra.mxu0 %v257_v12 }
  0x91   : > { %v259_v17 = vld [vmem:[#allocation2 + $0x10] sm:$0xff] }
  0x92   : > { %314 = vmatmul.f32.gmra.mxu0 %v259_v17 }
  0x99   : > { %v335_v41 = vpop.f32.mrf.mxu1 }
  0xa1   : > { %v338_v47 = vpop.f32.mrf.mxu1 }
 0x107   : > { %v312_v42 = vpop.f32.mrf.mxu0 }
 0x108   : > { %v313_v43 = vadd.f32 %v626_v40, %v312_v42 }
 0x10a   : > { %v336_v44 = vadd.f32 %v335_v41, %v313_v43 }
 0x10c   : > { %v341_v45 = vmax.f32 %v336_v44, 0.0 }
 0x10e   : > { %445 = vmatmul.f32.vlgmr.msra.gmra.mxu2 %v341_v45  ;;  %491 = vmatmul.f32.vlgmr.msrb.gmra.mxu1 %v341_v45  ;;  %v345_v51 = vrot.slane %v341_v45, 1 }
 0x10f   : > { %v315_v46 = vpop.f32.mrf.mxu0 }
 0x110   : > { %v316_v48 = vadd.f32 %v626_v40, %v315_v46 }
 0x112   : > { %v339_v49 = vadd.f32 %v338_v47, %v316_v48 }
 0x114   : > { %v342_v50 = vmax.f32 %v339_v49, 0.0 }
 0x116   : > { %448 = vmatmul.f32.gmra.mxu2 %v342_v50  ;;  %494 = vmatmul.f32.gmra.mxu1 %v342_v50  ;;  %v346_v52 = vrot.slane %v342_v50, 1 }
 0x118   : > { %v347_v53 = vsel %vm236_vm0, %v345_v51, %v346_v52 }
 0x119   : > { %468 = vmatmul.f32.vlgmr.msra.gmra.mxu3 %v347_v53  ;;  %514 = vmatmul.f32.vlgmr.msrb.gmra.mxu0 %v347_v53 }
 0x11e   : > { %600 = vmatmul.msk.f32.vlgmr.msrb.gmra.mxu2 %vm236_vm0, %v346_v52 }
 0x121   : > { %599 = vmatmul.msk.f32.gmra.mxu3 %vm236_vm0, %v346_v52 }
 0x18b   : > { %v492_v57 = vpop.f32.mrf.mxu1 }
 0x18c   : > { %v493_v58 = vadd.f32 %v492_v57, %v426_v55 }
 0x191   : > { %v446_v56 = vpop.f32.mrf.mxu2 }
 0x192   : > { %v447_v0 = vadd.f32 %v446_v56, %v425_v60 }
 0x193   : > { %v495_v2 = vpop.f32.mrf.mxu1 }
 0x194   : > { %v496_v5 = vadd.f32 %v495_v2, %v426_v55 }
 0x196   : > { %v515_v59 = vpop.f32.mrf.mxu0 }
 0x197   : > { %v516_v61 = vadd.f32 %v515_v59, %v493_v58 }
 0x199   : > { %v522_v62 = vmax.f32 %v516_v61, 0.0  ;;  %v449_v63 = vpop.f32.mrf.mxu2 }
 0x19a   : > { %v450_v8 = vadd.f32 %v449_v63, %v425_v60 }
 0x19b   : > { %526 = vst [vmem:[%s224_s24 + $0x8] sm:$0xff] %v522_v62 }
 0x19c   : > { %v469_v1 = vpop.f32.mrf.mxu3 }
 0x19d   : > { %v470_v3 = vadd.f32 %v469_v1, %v447_v0 }
 0x19f   : > { %v521_v4 = vmax.f32 %v470_v3, 0.0 }
 0x1a1   : > { %525 = vst [vmem:[%s224_s24] sm:$0xff] %v521_v4  ;;  %v518_v6 = vpop.f32.mrf.mxu2 }
 0x1a2   : > { %v519_v7 = vadd.f32 %v518_v6, %v496_v5 }
 0x1a4   : > { %v524_v9 = vmax.f32 %v519_v7, 0.0  ;;  %v472_v10 = vpop.f32.mrf.mxu3 }
 0x1a5   : > { %v473_v11 = vadd.f32 %v472_v10, %v450_v8 }
 0x1a6   : > { %528 = vst [vmem:[%s224_s24 + $0x18] sm:$0xff] %v524_v9 }
 0x1a7   : > { %v523_v12 = vmax.f32 %v473_v11, 0.0 }
 0x1a9   : > { %527 = vst [vmem:[%s224_s24 + $0x10] sm:$0xff] %v523_v12 }
 0x1aa PF: > { %s15_s18 = sadd.s32 1, %s633_s18  }
 0x1ab   : > { %p12_p4 = scmp.ge.s32.totalorder %s15_s18, 4  }
 0x1ad   :  { %14 = sbr.rel (!%p12_p4) target bundleno = 1 (0x1), region = 70 }

</bundles_post_ra>
